<compile_context>
chip_gen: v6e
topology: v6e:2x2x1
jax: 0.10.0
libtpu: 0.0.40
codegen_flags: <defaults>
</compile_context>

<pallas_src>
import functools

import jax
import jax.numpy as jnp
from jax.experimental import pallas as pl
from jax.experimental.pallas import tpu as pltpu

LANE = 128  # pad feature dims to the TPU lane width -> lane-dense stores


# --------------------------------------------------------------------------- #
# Pallas kernel: fused multi-layer GCN forward
#   H_0 = X;  H_{l+1} = relu_if_not_last( A_hat @ (H_l @ W_l) );  O = H_L
# --------------------------------------------------------------------------- #
def _gcn_fused_kernel(a_ref, x_ref, w_ref, o_ref, *, num_layers):
    a = a_ref[...]                        # bf16 [N, N] normalized adjacency
    h = x_ref[...].astype(jnp.float32)    # f32 working activations [N, 128]
    for layer in range(num_layers):       # static unroll: L is tiny (2 here)
        # Feature transform on the MXU (bf16 in, f32 accumulate).
        xw = jnp.dot(h.astype(jnp.bfloat16), w_ref[layer],
                     preferred_element_type=jnp.float32)
        # Neighborhood aggregation on the MXU.
        h = jnp.dot(a, xw.astype(jnp.bfloat16),
                    preferred_element_type=jnp.float32)
        if layer < num_layers - 1:
            h = jnp.maximum(h, 0.0)       # act == ReLU (free on the VPU)
            # dropout: module evaluated in eval mode -> identity
    o_ref[...] = h                        # single lane-dense [N, 128] store


def gcn_base_forward(x, a_hat, weights):
    """Runs the whole GCN_base forward in one fused Pallas kernel."""
    n, f_in = x.shape
    f_out_last = weights[-1].shape[1]
    num_layers = len(weights)

    # Zero-pad features / weights to LANE=128 and cast MXU operands to bf16.
    # Padding is exact: padded X columns are zero and padded W rows/cols are
    # zero, so padded output columns stay exactly zero through every layer.
    x_pad = jnp.zeros((n, LANE), jnp.bfloat16)
    x_pad = x_pad.at[:, :f_in].set(x.astype(jnp.bfloat16))
    w_stack = jnp.zeros((num_layers, LANE, LANE), jnp.bfloat16)
    for l, w in enumerate(weights):
        w_stack = w_stack.at[l, : w.shape[0], : w.shape[1]].set(
            w.astype(jnp.bfloat16)
        )
    a_bf16 = a_hat.astype(jnp.bfloat16)

    kernel = functools.partial(_gcn_fused_kernel, num_layers=num_layers)
    vmem_spec = pl.BlockSpec(memory_space=pltpu.MemorySpace.VMEM)
    out_pad = pl.pallas_call(
        kernel,
        out_shape=jax.ShapeDtypeStruct((n, LANE), jnp.float32),
        in_specs=[vmem_spec, vmem_spec, vmem_spec],   # A_hat, X_pad, W_stack
        out_specs=vmem_spec,
    )(a_bf16, x_pad, w_stack)

    return out_pad[:, :f_out_last]


# --------------------------------------------------------------------------- #
# Glue (plain JAX): normalized adjacency, parameter init, f32 reference
# --------------------------------------------------------------------------- #
def build_normalized_adjacency(edge_index, num_nodes):
    """A_hat = D^-1/2 (A + I) D^-1/2 (matches PyG gcn_norm for symmetric graphs;
    a directed edge_index would need PyG's exact degree convention)."""
    src, dst = edge_index[0], edge_index[1]
    a = jnp.zeros((num_nodes, num_nodes), jnp.float32)
    a = a.at[dst, src].add(1.0)                      # message flows src -> dst
    a = a + jnp.eye(num_nodes, dtype=jnp.float32)    # add_self_loops=True
    deg = a.sum(axis=1)
    d_inv_sqrt = jnp.where(deg > 0, 1.0 / jnp.sqrt(deg), 0.0)
    return d_inv_sqrt[:, None] * a * d_inv_sqrt[None, :]


def init_gcn_base_params(key, in_feats, n_hidden, n_layers):
    """GCN_base builds 1 + n_layers GCNConv layers, all bias=False (glorot)."""
    dims = [(in_feats, n_hidden)] + [(n_hidden, n_hidden)] * n_layers
    weights = []
    for f_in, f_out in dims:
        key, sub = jax.random.split(key)
        limit = jnp.sqrt(6.0 / (f_in + f_out))
        weights.append(
            jax.random.uniform(sub, (f_in, f_out), jnp.float32, -limit, limit)
        )
    return weights


def gcn_base_reference(x, a_hat, weights):
    """All-f32 reference of the module forward."""
    for w in weights[:-1]:
        x = jnp.maximum(a_hat @ (x @ w), 0.0)
    return a_hat @ (x @ weights[-1])


# --------------------------------------------------------------------------- #
if __name__ == "__main__":
    N = 128          # number of graph nodes
    IN_FEATS = 16
    N_HIDDEN = 32
    N_LAYERS = 1     # -> 2 GCNConv layers total (as in the module's __init__)

    key = jax.random.PRNGKey(0)
    k_x, k_e, k_w = jax.random.split(key, 3)

    # Node features.
    x = jax.random.normal(k_x, (N, IN_FEATS), jnp.float32)

    # Deterministic edge_index: a bidirectional ring plus symmetric chords.
    idx = jnp.arange(N)
    ring_src = jnp.concatenate([idx, (idx + 1) % N])
    ring_dst = jnp.concatenate([(idx + 1) % N, idx])
    chord_a = jax.random.randint(k_e, (64,), 0, N)
    chord_b = (chord_a * 7 + 13) % N
    src = jnp.concatenate([ring_src, chord_a, chord_b])
    dst = jnp.concatenate([ring_dst, chord_b, chord_a])
    edge_index = jnp.stack([src, dst], axis=0)       # shape [2, num_edges]

    a_hat = build_normalized_adjacency(edge_index, N)
    weights = init_gcn_base_params(k_w, IN_FEATS, N_HIDDEN, N_LAYERS)

    out = gcn_base_forward(x, a_hat, weights)
    out = jax.block_until_ready(out)

    ref = gcn_base_reference(x, a_hat, weights)
    assert out.shape == (N, N_HIDDEN)
    # bf16 MXU inputs with f32 accumulation vs. the all-f32 reference.
    assert jnp.allclose(out, ref, atol=3e-2, rtol=3e-2), float(
        jnp.max(jnp.abs(out - ref))
    )

    print("KERNEL_OK")
</pallas_src>

<mosaic_0001>
module attributes {stable_mosaic.version = 11 : i64} {
  func.func @_gcn_fused_kernel(%arg0: memref<128x128xbf16, #tpu.memory_space<vmem>>, %arg1: memref<128x128xbf16, #tpu.memory_space<vmem>>, %arg2: memref<2x128x128xbf16, #tpu.memory_space<vmem>>, %arg3: memref<128x128xf32, #tpu.memory_space<vmem>>) attributes {dimension_semantics = [], scalar_prefetch = 0 : i64, scratch_operands = 0 : i64, tpu.core_type = #tpu.core_type<tc>} {
    %c0 = arith.constant 0 : index
    %c0_0 = arith.constant 0 : index
    %0 = vector.load %arg0[%c0, %c0_0] : memref<128x128xbf16, #tpu.memory_space<vmem>>, vector<128x128xbf16>
    %c0_1 = arith.constant 0 : index
    %c0_2 = arith.constant 0 : index
    %1 = vector.load %arg1[%c0_1, %c0_2] : memref<128x128xbf16, #tpu.memory_space<vmem>>, vector<128x128xbf16>
    %2 = arith.extf %1 : vector<128x128xbf16> to vector<128x128xf32>
    %3 = arith.truncf %2 : vector<128x128xf32> to vector<128x128xbf16>
    %c0_3 = arith.constant 0 : index
    %c0_4 = arith.constant 0 : index
    %c0_5 = arith.constant 0 : index
    %4 = vector.load %arg2[%c0_3, %c0_4, %c0_5] : memref<2x128x128xbf16, #tpu.memory_space<vmem>>, vector<1x128x128xbf16>
    %5 = vector.shape_cast %4 : vector<1x128x128xbf16> to vector<128x128xbf16>
    %cst = arith.constant dense<0.000000e+00> : vector<128x128xf32>
    %6 = tpu.matmul %3, %5, %cst {dimension_numbers = #tpu.dot_dimension_numbers<[1], [0], [0], [1], [0, 0, 1, 1], [], []>} : vector<128x128xbf16>, vector<128x128xbf16>, vector<128x128xf32> -> vector<128x128xf32>
    %7 = arith.truncf %6 : vector<128x128xf32> to vector<128x128xbf16>
    %cst_6 = arith.constant dense<0.000000e+00> : vector<128x128xf32>
    %8 = tpu.matmul %0, %7, %cst_6 {dimension_numbers = #tpu.dot_dimension_numbers<[1], [0], [0], [1], [0, 0, 1, 1], [], []>} : vector<128x128xbf16>, vector<128x128xbf16>, vector<128x128xf32> -> vector<128x128xf32>
    %cst_7 = arith.constant 0.000000e+00 : f32
    %9 = vector.broadcast %cst_7 : f32 to vector<128x128xf32>
    %10 = arith.maximumf %8, %9 : vector<128x128xf32>
    %11 = arith.truncf %10 : vector<128x128xf32> to vector<128x128xbf16>
    %c1 = arith.constant 1 : index
    %c0_8 = arith.constant 0 : index
    %c0_9 = arith.constant 0 : index
    %12 = vector.load %arg2[%c1, %c0_8, %c0_9] : memref<2x128x128xbf16, #tpu.memory_space<vmem>>, vector<1x128x128xbf16>
    %13 = vector.shape_cast %12 : vector<1x128x128xbf16> to vector<128x128xbf16>
    %cst_10 = arith.constant dense<0.000000e+00> : vector<128x128xf32>
    %14 = tpu.matmul %11, %13, %cst_10 {dimension_numbers = #tpu.dot_dimension_numbers<[1], [0], [0], [1], [0, 0, 1, 1], [], []>} : vector<128x128xbf16>, vector<128x128xbf16>, vector<128x128xf32> -> vector<128x128xf32>
    %15 = arith.truncf %14 : vector<128x128xf32> to vector<128x128xbf16>
    %cst_11 = arith.constant dense<0.000000e+00> : vector<128x128xf32>
    %16 = tpu.matmul %0, %15, %cst_11 {dimension_numbers = #tpu.dot_dimension_numbers<[1], [0], [0], [1], [0, 0, 1, 1], [], []>} : vector<128x128xbf16>, vector<128x128xbf16>, vector<128x128xf32> -> vector<128x128xf32>
    %c0_12 = arith.constant 0 : index
    %c0_13 = arith.constant 0 : index
    %17 = vector.load %arg3[%c0_12, %c0_13] : memref<128x128xf32, #tpu.memory_space<vmem>>, vector<128x128xf32>
    tpu.vector_store %arg3[%c0_12, %c0_13], %16 {strides = array<i32>} : memref<128x128xf32, #tpu.memory_space<vmem>>, vector<128x128xf32>,
    return
  }
}

</mosaic_0001>

<bundles_post_ra>
// kernel: tpu_custom_call.1
= control target key start
LH: loop header
LB: loop body
LE: loop exit
PB: predicated region body
PF: predicated region fallthrough
CT: control target
= control target key end

     0   :  { %8 = vsyncpa [#allocation3], 0  ;;  %s1198_s0 = inlined_call_operand.hbm [shape: bf16[128,128], index: 0, kind: input, shape index: {}]   ;;  %s1199_s1 = inlined_call_operand.hbm [shape: bf16[128,128], index: 1, kind: input, shape index: {}]   ;;  %s1200_s2 = inlined_call_operand.hbm [shape: bf16[2,128,128], index: 2, kind: input, shape index: {}]   ;;  %s1201_s3 = inlined_call_operand.hbm [shape: f32[128,128], index: 3, kind: output, shape index: {}]  }
   0x1   :  { %9 = vsyncpa [#allocation6], 0 }
   0x2   :  { %10 = vsyncpa [#allocation4], 0  ;;  %s1126_s12 = smov [#allocation5]   ;;  %s1127_s14 = smov [#allocation2]  }
   0x3   :  { %s28_s13 = sshll.u32 %s1126_s12, 4  ;;  %s16_s15 = sshll.u32 %s1127_s14, 4  ;;  %s29_s13 = int_to_ptr.vmem [resolvable:$true] %s28_s13  ;;  %s17_s15 = int_to_ptr.vmem [resolvable:$true] %s16_s15 }
   0x4   :  { %s1048_s16 = scalar_lea.vmem %s29_s13, 1024  ;;  %p1053_p1 = scmp.lt.s32.totalorder %s29_s13, %s29_s13 }
   0x5   :  { %p1049_p0 = scmp.ne.s32.totalorder %s29_s13, %s1048_s16  ;;  %p1054_p2 = scmp.lt.s32.totalorder %s1048_s16, %s1048_s16 }
   0x7   :  { %p1055_p3 = por %p1054_p2, %p1053_p1 }
   0x9   :  { %p1056_p4 = pnand %p1055_p3, %p1049_p0 }
   0xb   :  { %1059 = shalt.err (!%p1056_p4)
}
   0xc   :  { %s1128_s17 = smov 64   ;;  %s1129_s18 = smov 4  }
   0xd   :  { %34 = dma.hbm_to_vmem [thread:$0]  %s1199_s1, 1024, %s29_s13, [#allocation6], %s1128_s17, %s1128_s17, %s1129_s18  }
   0xe   :  { %s1068_s21 = scalar_lea.vmem %s17_s15, 1024  ;;  %p1073_p6 = scmp.lt.s32.totalorder %s17_s15, %s17_s15 }
   0xf   :  { %p1069_p5 = scmp.ne.s32.totalorder %s17_s15, %s1068_s21  ;;  %p1074_p7 = scmp.lt.s32.totalorder %s1068_s21, %s1068_s21 }
  0x11   :  { %p1075_p8 = por %p1074_p7, %p1073_p6 }
  0x13   :  { %p1076_p9 = pnand %p1075_p8, %p1069_p5 }
  0x15   :  { %1079 = shalt.err (!%p1076_p9)
}
  0x16   :  { %22 = dma.hbm_to_vmem [thread:$0]  %s1198_s0, 1024, %s17_s15, [#allocation3], %s1128_s17, %s1128_s17, %s1129_s18  }
  0x17   :  { %s1130_s24 = smov [#allocation7]  }
  0x18   :  { %s40_s25 = sshll.u32 %s1130_s24, 4  ;;  %s41_s25 = int_to_ptr.vmem [resolvable:$true] %s40_s25 }
  0x19   :  { %s1088_s26 = scalar_lea.vmem %s41_s25, 2048  ;;  %p1093_p11 = scmp.lt.s32.totalorder %s41_s25, %s41_s25 }
  0x1a   :  { %p1089_p10 = scmp.ne.s32.totalorder %s41_s25, %s1088_s26  ;;  %p1094_p12 = scmp.lt.s32.totalorder %s1088_s26, %s1088_s26 }
  0x1c   :  { %p1095_p13 = por %p1094_p12, %p1093_p11 }
  0x1e   :  { %p1096_p0 = pnand %p1095_p13, %p1089_p10 }
  0x20   :  { %1099 = shalt.err (!%p1096_p0)
}
  0x21   :  { %46 = dma.hbm_to_vmem [thread:$0]  %s1200_s2, 2048, %s41_s25, [#allocation6], %s1128_s17, %s1128_s17, %s1129_s18  }
  0x22   :  { %1120 = dma.done.wait [#allocation3], 1024  }
  0x23   :  { %1121 = vsyncadd [#allocation3], 4294966272 }
  0x24   :  { %1122 = dma.done.wait [#allocation6], 3072  }
  0x25   :  { %1123 = vsyncadd [#allocation6], 4294964224  ;;  %v1008_v0 = vld [vmem:[#allocation7 + $0x38] sm:$0xff]   ;;  %v1009_v1 = vld [vmem:[#allocation7 + $0x30] sm:$0xff]   ;;  %s1131_s0 = smov [#allocation8]  }
  0x26   :  { %872 = vmatprep.subr.bf16.mxu0 %v1008_v0  ;;  %v1010_v2 = vld [vmem:[#allocation7 + $0x28] sm:$0xff]   ;;  %v1011_v3 = vld [vmem:[#allocation7 + $0x20] sm:$0xff]   ;;  %v1012_v5 = vld [vmem:[#allocation7 + $0x18] sm:$0xff]   ;;  %s763_s2 = sshll.u32 %s1131_s0, 4  ;;  %s764_s2 = int_to_ptr.vmem [resolvable:$true] %s763_s2 }
  0x27   :  { %873 = vmatpush3.bf16.msra.mxu0 %v1008_v0  ;;  %v1016_v4 = vld [vmem:[#allocation5] sm:$0xff]   ;;  %v1013_v6 = vld [vmem:[#allocation7 + $0x10] sm:$0xff]   ;;  %v1014_v7 = vld [vmem:[#allocation7 + $0x8] sm:$0xff]   ;;  %s1100_s28 = scalar_lea.vmem %s764_s2, 2048  ;;  %p1105_p2 = scmp.lt.s32.totalorder %s764_s2, %s764_s2 }
  0x28   :  { %874 = vmatprep.subr.bf16.mxu0 %v1009_v1  ;;  %888 = vmatprep.mubr.bf16.mxu0 %v1016_v4  ;;  %v1015_v8 = vld [vmem:[#allocation7] sm:$0xff]   ;;  %v1017_v9 = vld [vmem:[#allocation5 + $0x8] sm:$0xff]   ;;  %v1018_v10 = vld [vmem:[#allocation5 + $0x10] sm:$0xff]   ;;  %p1101_p1 = scmp.ne.s32.totalorder %s764_s2, %s1100_s28  ;;  %p1106_p3 = scmp.lt.s32.totalorder %s1100_s28, %s1100_s28 }
  0x29   :  { %v1019_v11 = vld [vmem:[#allocation5 + $0x18] sm:$0xff]   ;;  %v1020_v12 = vld [vmem:[#allocation5 + $0x20] sm:$0xff]   ;;  %v1021_v13 = vld [vmem:[#allocation5 + $0x28] sm:$0xff]  }
  0x2a   :  { %v1022_v14 = vld [vmem:[#allocation5 + $0x30] sm:$0xff]   ;;  %v1023_v15 = vld [vmem:[#allocation5 + $0x38] sm:$0xff]   ;;  %v1163_v16 = vld [vmem:[#allocation2] sm:$0xff]   ;;  %p1107_p4 = por %p1106_p3, %p1105_p2 }
  0x2b   :  { %875 = vmatpush3.bf16.msra.mxu0 %v1009_v1  ;;  %920 = vmatprep.mubr.bf16.mxu1 %v1163_v16  ;;  %v1032_v17 = vld [vmem:[#allocation7 + $0x78] sm:$0xff]   ;;  %v1033_v18 = vld [vmem:[#allocation7 + $0x70] sm:$0xff]   ;;  %v1034_v19 = vld [vmem:[#allocation7 + $0x68] sm:$0xff]  }
  0x2c   :  { %876 = vmatprep.subr.bf16.mxu0 %v1010_v2  ;;  %v1035_v20 = vld [vmem:[#allocation7 + $0x60] sm:$0xff]   ;;  %v1036_v21 = vld [vmem:[#allocation7 + $0x58] sm:$0xff]   ;;  %v1166_v46 = vld [vmem:[#allocation2 + $0x8] sm:$0xff]   ;;  %p1108_p5 = pnand %p1107_p4, %p1101_p1 }
  0x2d   :  { %v1168_v47 = vld [vmem:[#allocation2 + $0x10] sm:$0xff]   ;;  %v1172_v48 = vld [vmem:[#allocation2 + $0x18] sm:$0xff]   ;;  %v1174_v49 = vld [vmem:[#allocation2 + $0x20] sm:$0xff]  }
  0x2e   :  { %v1178_v50 = vld [vmem:[#allocation2 + $0x28] sm:$0xff]   ;;  %v1180_v51 = vld [vmem:[#allocation2 + $0x30] sm:$0xff]   ;;  %v1184_v52 = vld [vmem:[#allocation2 + $0x38] sm:$0xff]  }
  0x2f   :  { %877 = vmatpush3.bf16.msra.mxu0 %v1010_v2  ;;  %v1037_v53 = vld [vmem:[#allocation7 + $0x50] sm:$0xff]   ;;  %v1038_v54 = vld [vmem:[#allocation7 + $0x48] sm:$0xff]   ;;  %v1039_v55 = vld [vmem:[#allocation7 + $0x40] sm:$0xff]  }
  0x30   :  { %878 = vmatprep.subr.bf16.mxu0 %v1011_v3 }
  0x33   :  { %879 = vmatpush3.bf16.msra.mxu0 %v1011_v3 }
  0x34   :  { %880 = vmatprep.subr.bf16.mxu0 %v1012_v5 }
  0x37   :  { %881 = vmatpush3.bf16.msra.mxu0 %v1012_v5 }
  0x38   :  { %882 = vmatprep.subr.bf16.mxu0 %v1013_v6 }
  0x3b   :  { %883 = vmatpush3.bf16.msra.mxu0 %v1013_v6 }
  0x3c   :  { %884 = vmatprep.subr.bf16.mxu0 %v1014_v7 }
  0x3f   :  { %885 = vmatpush3.bf16.msra.mxu0 %v1014_v7 }
  0x40   :  { %886 = vmatprep.subr.bf16.mxu0 %v1015_v8 }
  0x43   :  { %887 = vmatpush3.bf16.msra.mxu0 %v1015_v8 }
  0x44   :  { %936 = vmatprep.subr.bf16.mxu0 %v1032_v17 }
  0x46   :  { %889 = vmatmul.mubr.bf16.vlgmr.msra.gmra.mxu0 %v1017_v9 }
  0x47   :  { %892 = vmatprep.mubr.bf16.mxu0 %v1018_v10  ;;  %937 = vmatpush3.bf16.msra.mxu0 %v1032_v17 }
  0x48   :  { %938 = vmatprep.subr.bf16.mxu0 %v1033_v18 }
  0x4b   :  { %939 = vmatpush3.bf16.msra.mxu0 %v1033_v18 }
  0x4c   :  { %940 = vmatprep.subr.bf16.mxu0 %v1034_v19 }
  0x4e   :  { %893 = vmatmul.mubr.bf16.gmra.mxu0 %v1019_v11 }
  0x4f   :  { %896 = vmatprep.mubr.bf16.mxu0 %v1020_v12  ;;  %941 = vmatpush3.bf16.msra.mxu0 %v1034_v19 }
  0x50   :  { %942 = vmatprep.subr.bf16.mxu0 %v1035_v20 }
  0x53   :  { %943 = vmatpush3.bf16.msra.mxu0 %v1035_v20 }
  0x54   :  { %944 = vmatprep.subr.bf16.mxu0 %v1036_v21 }
  0x56   :  { %897 = vmatmul.mubr.bf16.gmra.mxu0 %v1021_v13 }
  0x57   :  { %900 = vmatprep.mubr.bf16.mxu0 %v1022_v14  ;;  %945 = vmatpush3.bf16.msra.mxu0 %v1036_v21 }
  0x58   :  { %946 = vmatprep.subr.bf16.mxu0 %v1037_v53 }
  0x5b   :  { %947 = vmatpush3.bf16.msra.mxu0 %v1037_v53 }
  0x5c   :  { %948 = vmatprep.subr.bf16.mxu0 %v1038_v54 }
  0x5e   :  { %901 = vmatmul.mubr.bf16.gmra.mxu0 %v1023_v15 }
  0x5f   :  { %949 = vmatpush3.bf16.msra.mxu0 %v1038_v54 }
  0x60   :  { %950 = vmatprep.subr.bf16.mxu0 %v1039_v55 }
  0x63   :  { %951 = vmatpush3.bf16.msra.mxu0 %v1039_v55 }
 0x106   :  { %v890_v22 = vpop.f32.mrf.mxu0 }
 0x108   :  { %v235_v23 = vpop.f32.mrf.mxu0 }
 0x10a   :  { %v891_v24 = vpop.f32.mrf.mxu0 }
 0x10b   :  { %v299_v44 = vpack.c.bf16 %v891_v24, %v890_v22 }
 0x10c   :  { %v238_v25 = vpop.f32.mrf.mxu0 }
 0x10d   :  { %v298_v45 = vpack.c.bf16 %v238_v25, %v235_v23 }
 0x10e   :  { %v894_v26 = vpop.f32.mrf.mxu0 }
 0x110   :  { %v251_v27 = vpop.f32.mrf.mxu0 }
 0x112   :  { %v895_v28 = vpop.f32.mrf.mxu0 }
 0x113   :  { %v301_v42 = vpack.c.bf16 %v895_v28, %v894_v26 }
 0x114   :  { %v254_v29 = vpop.f32.mrf.mxu0 }
 0x115   :  { %v300_v43 = vpack.c.bf16 %v254_v29, %v251_v27 }
 0x116   :  { %v898_v30 = vpop.f32.mrf.mxu0 }
 0x118   :  { %v267_v31 = vpop.f32.mrf.mxu0 }
 0x11a   :  { %v899_v32 = vpop.f32.mrf.mxu0 }
 0x11b   :  { %v303_v40 = vpack.c.bf16 %v899_v32, %v898_v30 }
 0x11c   :  { %v270_v33 = vpop.f32.mrf.mxu0 }
 0x11d   :  { %v302_v41 = vpack.c.bf16 %v270_v33, %v267_v31 }
 0x11e   :  { %v902_v34 = vpop.f32.mrf.mxu0 }
 0x120   :  { %v283_v35 = vpop.f32.mrf.mxu0 }
 0x122   :  { %v903_v36 = vpop.f32.mrf.mxu0 }
 0x123   :  { %v305_v37 = vpack.c.bf16 %v903_v36, %v902_v34 }
 0x124   :  { %v286_v38 = vpop.f32.mrf.mxu0 }
 0x125   :  { %v304_v39 = vpack.c.bf16 %v286_v38, %v283_v35  ;;  %904 = vmatprep.subr.bf16.mxu1 %v305_v37 }
 0x126   :  { %905 = vmatpush3.bf16.msra.mxu1 %v305_v37 }
 0x127   :  { %906 = vmatprep.subr.bf16.mxu1 %v304_v39 }
 0x12a   :  { %907 = vmatpush3.bf16.msra.mxu1 %v304_v39 }
 0x12b   :  { %908 = vmatprep.subr.bf16.mxu1 %v303_v40 }
 0x12e   :  { %909 = vmatpush3.bf16.msra.mxu1 %v303_v40 }
 0x12f   :  { %910 = vmatprep.subr.bf16.mxu1 %v302_v41 }
 0x132   :  { %911 = vmatpush3.bf16.msra.mxu1 %v302_v41 }
 0x133   :  { %912 = vmatprep.subr.bf16.mxu1 %v301_v42 }
 0x136   :  { %913 = vmatpush3.bf16.msra.mxu1 %v301_v42 }
 0x137   :  { %914 = vmatprep.subr.bf16.mxu1 %v300_v43 }
 0x13a   :  { %915 = vmatpush3.bf16.msra.mxu1 %v300_v43 }
 0x13b   :  { %916 = vmatprep.subr.bf16.mxu1 %v299_v44 }
 0x13e   :  { %917 = vmatpush3.bf16.msra.mxu1 %v299_v44 }
 0x13f   :  { %918 = vmatprep.subr.bf16.mxu1 %v298_v45 }
 0x142   :  { %919 = vmatpush3.bf16.msra.mxu1 %v298_v45 }
 0x145   :  { %921 = vmatmul.mubr.bf16.vlgmr.msra.gmra.mxu1 %v1166_v46 }
 0x146   :  { %924 = vmatprep.mubr.bf16.mxu1 %v1168_v47 }
 0x14d   :  { %925 = vmatmul.mubr.bf16.gmra.mxu1 %v1172_v48 }
 0x14e   :  { %928 = vmatprep.mubr.bf16.mxu1 %v1174_v49 }
 0x155   :  { %929 = vmatmul.mubr.bf16.gmra.mxu1 %v1178_v50 }
 0x156   :  { %932 = vmatprep.mubr.bf16.mxu1 %v1180_v51 }
 0x15d   :  { %933 = vmatmul.mubr.bf16.gmra.mxu1 %v1184_v52 }
 0x15e   :  { %984 = vmatprep.mubr.bf16.mxu1 %v1163_v16 }
 0x205   :  { %v922_v56 = vpop.f32.mrf.mxu1 }
 0x206   :  { %v453_v63 = vmax.f32 %v922_v56, 0.0 }
 0x207   :  { %v388_v57 = vpop.f32.mrf.mxu1 }
 0x208   :  { %v451_v61 = vmax.f32 %v388_v57, 0.0 }
 0x209   :  { %v923_v58 = vpop.f32.mrf.mxu1 }
 0x20a   :  { %v454_v59 = vmax.f32 %v923_v58, 0.0 }
 0x20b   :  { %v391_v60 = vpop.f32.mrf.mxu1 }
 0x20c   :  { %v452_v62 = vmax.f32 %v391_v60, 0.0  ;;  %v468_v2 = vpack.c.bf16 %v454_v59, %v453_v63 }
 0x20d   :  { %v926_v0 = vpop.f32.mrf.mxu1 }
 0x20e   :  { %v467_v1 = vpack.c.bf16 %v452_v62, %v451_v61  ;;  %v457_v9 = vmax.f32 %v926_v0, 0.0 }
 0x20f   :  { %v404_v3 = vpop.f32.mrf.mxu1 }
 0x210   :  { %952 = vmatprep.mubr.bf16.mxu0 %v467_v1  ;;  %v455_v7 = vmax.f32 %v404_v3, 0.0 }
 0x211   :  { %v927_v4 = vpop.f32.mrf.mxu1  ;;  %953 = vmatmul.mubr.bf16.vlgmr.msra.gmra.mxu0 %v468_v2 }
 0x212   :  { %v458_v5 = vmax.f32 %v927_v4, 0.0 }
 0x213   :  { %v407_v6 = vpop.f32.mrf.mxu1 }
 0x214   :  { %v456_v8 = vmax.f32 %v407_v6, 0.0  ;;  %v470_v12 = vpack.c.bf16 %v458_v5, %v457_v9 }
 0x215   :  { %v930_v10 = vpop.f32.mrf.mxu1 }
 0x216   :  { %v469_v11 = vpack.c.bf16 %v456_v8, %v455_v7  ;;  %v461_v19 = vmax.f32 %v930_v10, 0.0 }
 0x217   :  { %v420_v13 = vpop.f32.mrf.mxu1 }
 0x218   :  { %956 = vmatprep.mubr.bf16.mxu0 %v469_v11  ;;  %v459_v17 = vmax.f32 %v420_v13, 0.0 }
 0x219   :  { %v931_v14 = vpop.f32.mrf.mxu1  ;;  %957 = vmatmul.mubr.bf16.gmra.mxu0 %v470_v12 }
 0x21a   :  { %v462_v15 = vmax.f32 %v931_v14, 0.0 }
 0x21b   :  { %v423_v16 = vpop.f32.mrf.mxu1 }
 0x21c   :  { %v460_v18 = vmax.f32 %v423_v16, 0.0  ;;  %v472_v22 = vpack.c.bf16 %v462_v15, %v461_v19 }
 0x21d   :  { %v934_v20 = vpop.f32.mrf.mxu1 }
 0x21e   :  { %v471_v21 = vpack.c.bf16 %v460_v18, %v459_v17  ;;  %v465_v29 = vmax.f32 %v934_v20, 0.0 }
 0x21f   :  { %v436_v23 = vpop.f32.mrf.mxu1 }
 0x220   :  { %960 = vmatprep.mubr.bf16.mxu0 %v471_v21  ;;  %v463_v27 = vmax.f32 %v436_v23, 0.0 }
 0x221   :  { %v935_v24 = vpop.f32.mrf.mxu1  ;;  %961 = vmatmul.mubr.bf16.gmra.mxu0 %v472_v22 }
 0x222   :  { %v466_v25 = vmax.f32 %v935_v24, 0.0 }
 0x223   :  { %v439_v26 = vpop.f32.mrf.mxu1 }
 0x224   :  { %v464_v28 = vmax.f32 %v439_v26, 0.0  ;;  %v474_v31 = vpack.c.bf16 %v466_v25, %v465_v29 }
 0x226   :  { %v473_v30 = vpack.c.bf16 %v464_v28, %v463_v27 }
 0x228   :  { %964 = vmatprep.mubr.bf16.mxu0 %v473_v30 }
 0x229   :  { %965 = vmatmul.mubr.bf16.gmra.mxu0 %v474_v31 }
 0x2d1   :  { %v954_v32 = vpop.f32.mrf.mxu0 }
 0x2d3   :  { %v574_v33 = vpop.f32.mrf.mxu0 }
 0x2d5   :  { %v955_v34 = vpop.f32.mrf.mxu0 }
 0x2d6   :  { %v638_v61 = vpack.c.bf16 %v955_v34, %v954_v32 }
 0x2d7   :  { %v577_v35 = vpop.f32.mrf.mxu0 }
 0x2d8   :  { %v637_v62 = vpack.c.bf16 %v577_v35, %v574_v33 }
 0x2d9   :  { %v958_v36 = vpop.f32.mrf.mxu0 }
 0x2db   :  { %v590_v37 = vpop.f32.mrf.mxu0 }
 0x2dd   :  { %v959_v38 = vpop.f32.mrf.mxu0 }
 0x2de   :  { %v640_v59 = vpack.c.bf16 %v959_v38, %v958_v36 }
 0x2df   :  { %v593_v39 = vpop.f32.mrf.mxu0 }
 0x2e0   :  { %v639_v60 = vpack.c.bf16 %v593_v39, %v590_v37 }
 0x2e1   :  { %v962_v40 = vpop.f32.mrf.mxu0 }
 0x2e3   :  { %v606_v41 = vpop.f32.mrf.mxu0 }
 0x2e5   :  { %v963_v42 = vpop.f32.mrf.mxu0 }
 0x2e6   :  { %v642_v57 = vpack.c.bf16 %v963_v42, %v962_v40 }
 0x2e7   :  { %v609_v43 = vpop.f32.mrf.mxu0 }
 0x2e8   :  { %v641_v58 = vpack.c.bf16 %v609_v43, %v606_v41 }
 0x2e9   :  { %v966_v44 = vpop.f32.mrf.mxu0 }
 0x2eb   :  { %v622_v45 = vpop.f32.mrf.mxu0 }
 0x2ed   :  { %v967_v53 = vpop.f32.mrf.mxu0 }
 0x2ee   :  { %v644_v54 = vpack.c.bf16 %v967_v53, %v966_v44 }
 0x2ef   :  { %v625_v55 = vpop.f32.mrf.mxu0 }
 0x2f0   :  { %v643_v56 = vpack.c.bf16 %v625_v55, %v622_v45  ;;  %968 = vmatprep.subr.bf16.mxu1 %v644_v54 }
 0x2f1   :  { %969 = vmatpush3.bf16.msra.mxu1 %v644_v54 }
 0x2f2   :  { %970 = vmatprep.subr.bf16.mxu1 %v643_v56 }
 0x2f5   :  { %971 = vmatpush3.bf16.msra.mxu1 %v643_v56 }
 0x2f6   :  { %972 = vmatprep.subr.bf16.mxu1 %v642_v57 }
 0x2f9   :  { %973 = vmatpush3.bf16.msra.mxu1 %v642_v57 }
 0x2fa   :  { %974 = vmatprep.subr.bf16.mxu1 %v641_v58 }
 0x2fd   :  { %975 = vmatpush3.bf16.msra.mxu1 %v641_v58 }
 0x2fe   :  { %976 = vmatprep.subr.bf16.mxu1 %v640_v59 }
 0x301   :  { %977 = vmatpush3.bf16.msra.mxu1 %v640_v59 }
 0x302   :  { %978 = vmatprep.subr.bf16.mxu1 %v639_v60 }
 0x305   :  { %979 = vmatpush3.bf16.msra.mxu1 %v639_v60 }
 0x306   :  { %980 = vmatprep.subr.bf16.mxu1 %v638_v61 }
 0x309   :  { %981 = vmatpush3.bf16.msra.mxu1 %v638_v61 }
 0x30a   :  { %982 = vmatprep.subr.bf16.mxu1 %v637_v62 }
 0x30d   :  { %983 = vmatpush3.bf16.msra.mxu1 %v637_v62 }
 0x310   :  { %985 = vmatmul.mubr.bf16.vlgmr.msra.gmra.mxu1 %v1166_v46 }
 0x311   :  { %988 = vmatprep.mubr.bf16.mxu1 %v1168_v47 }
 0x318   :  { %989 = vmatmul.mubr.bf16.gmra.mxu1 %v1172_v48 }
 0x319   :  { %992 = vmatprep.mubr.bf16.mxu1 %v1174_v49 }
 0x320   :  { %993 = vmatmul.mubr.bf16.gmra.mxu1 %v1178_v50 }
 0x321   :  { %996 = vmatprep.mubr.bf16.mxu1 %v1180_v51 }
 0x328   :  { %997 = vmatmul.mubr.bf16.gmra.mxu1 %v1184_v52 }
 0x3d0   :  { %v986_v63 = vpop.f32.mrf.mxu1 }
 0x3d1   :  { %744 = vst [vmem:[#allocation8 + $0x10] sm:$0xff] %v986_v63 }
 0x3d2   :  { %v679_v0 = vpop.f32.mrf.mxu1 }
 0x3d3   :  { %742 = vst [vmem:[#allocation8] sm:$0xff] %v679_v0 }
 0x3d4   :  { %v987_v1 = vpop.f32.mrf.mxu1 }
 0x3d5   :  { %745 = vst [vmem:[#allocation8 + $0x18] sm:$0xff] %v987_v1 }
 0x3d6   :  { %v682_v2 = vpop.f32.mrf.mxu1 }
 0x3d7   :  { %743 = vst [vmem:[#allocation8 + $0x8] sm:$0xff] %v682_v2 }
 0x3d8   :  { %v990_v46 = vpop.f32.mrf.mxu1 }
 0x3d9   :  { %748 = vst [vmem:[#allocation8 + $0x30] sm:$0xff] %v990_v46 }
 0x3da   :  { %v695_v47 = vpop.f32.mrf.mxu1 }
 0x3db   :  { %746 = vst [vmem:[#allocation8 + $0x20] sm:$0xff] %v695_v47 }
 0x3dc   :  { %v991_v48 = vpop.f32.mrf.mxu1 }
 0x3dd   :  { %749 = vst [vmem:[#allocation8 + $0x38] sm:$0xff] %v991_v48 }
 0x3de   :  { %v698_v49 = vpop.f32.mrf.mxu1 }
 0x3df   :  { %747 = vst [vmem:[#allocation8 + $0x28] sm:$0xff] %v698_v49 }
 0x3e0   :  { %v994_v50 = vpop.f32.mrf.mxu1 }
 0x3e1   :  { %752 = vst [vmem:[#allocation8 + $0x50] sm:$0xff] %v994_v50 }
 0x3e2   :  { %v711_v51 = vpop.f32.mrf.mxu1 }
 0x3e3   :  { %750 = vst [vmem:[#allocation8 + $0x40] sm:$0xff] %v711_v51 }
 0x3e4   :  { %v995_v52 = vpop.f32.mrf.mxu1 }
 0x3e5   :  { %753 = vst [vmem:[#allocation8 + $0x58] sm:$0xff] %v995_v52 }
 0x3e6   :  { %v714_v3 = vpop.f32.mrf.mxu1 }
 0x3e7   :  { %751 = vst [vmem:[#allocation8 + $0x48] sm:$0xff] %v714_v3 }
 0x3e8   :  { %v998_v4 = vpop.f32.mrf.mxu1 }
 0x3e9   :  { %756 = vst [vmem:[#allocation8 + $0x70] sm:$0xff] %v998_v4 }
 0x3ea   :  { %v727_v5 = vpop.f32.mrf.mxu1 }
 0x3eb   :  { %754 = vst [vmem:[#allocation8 + $0x60] sm:$0xff] %v727_v5 }
 0x3ec   :  { %v999_v6 = vpop.f32.mrf.mxu1 }
 0x3ed   :  { %757 = vst [vmem:[#allocation8 + $0x78] sm:$0xff] %v999_v6 }
 0x3ee   :  { %v730_v7 = vpop.f32.mrf.mxu1 }
 0x3ef   :  { %755 = vst [vmem:[#allocation8 + $0x68] sm:$0xff] %v730_v7 }
 0x3f0   :  { %1111 = shalt.err (!%p1108_p5)
}
 0x3f1   :  { %s1132_s29 = smov 128   ;;  %s1133_s30 = smov 8  }
 0x3f2   :  { %769 = dma.vmem_to_hbm [thread:$0]  %s764_s2, 2048, %s1201_s3, [#allocation4], %s1132_s29, %s1132_s29, %s1133_s30  }
 0x3f3   :  { %1124 = dma.done.wait [#allocation4], 2048  }
 0x3f4   :  { %1125 = vsyncadd [#allocation4], 4294965248 }
 0x3f5   :  { %773 = vsyncpa [#allocation3], 1 }
 0x3f6   :  { %774 = vsyncpa [#allocation6], 1 }
 0x3f7   :  { %775 = vsyncpa [#allocation4], 1 }

</bundles_post_ra>
